<compile_context>
chip_gen: v7x
topology: tpu7x:2x2x1
jax: 0.10.0
libtpu: 0.0.40
codegen_flags: <defaults>
</compile_context>

<pallas_src>
import functools

import numpy as np
import jax
import jax.numpy as jnp
from jax.experimental import pallas as pl
from jax.experimental.pallas import tpu as pltpu


def _interp_matrix(out_size: int, in_size: int, align_corners: bool = True) -> np.ndarray:
    """Dense (out_size, in_size) 1-D linear interpolation matrix (PyTorch semantics).

    Computed on host in float64 to avoid coordinate-rounding drift on large sizes.
    """
    out_idx = np.arange(out_size, dtype=np.float64)
    if align_corners:
        if out_size == 1:
            src = np.zeros((out_size,), dtype=np.float64)
        else:
            src = out_idx * (in_size - 1) / (out_size - 1)
    else:
        src = (out_idx + 0.5) * (in_size / out_size) - 0.5
        src = np.maximum(src, 0.0)  # PyTorch clamps the lower end only
    i0 = np.clip(np.floor(src).astype(np.int64), 0, in_size - 1)
    i1 = np.minimum(i0 + 1, in_size - 1)
    frac = src - i0.astype(np.float64)
    w = np.zeros((out_size, in_size), dtype=np.float64)
    rows = np.arange(out_size)
    np.add.at(w, (rows, i0), 1.0 - frac)
    np.add.at(w, (rows, i1), frac)
    return w


def _largest_divisor_leq(n: int, cap: int) -> int:
    cap = max(1, min(n, cap))
    for d in range(cap, 0, -1):
        if n % d == 0:
            return d
    return 1


def _vmem_capacity_bytes() -> int:
    """Physical VMEM capacity; conservative 64 MiB (v7x per-core) fallback."""
    try:
        cap = int(pltpu.get_tpu_info().vmem_capacity_bytes)
        if cap > 0:
            return cap
    except Exception:
        pass
    return 64 * 1024 * 1024


def _interp_kernel_nat(wht_ref, wwt_ref, x_ref, o_ref):
    """out[b] = Wh @ x[b] @ Ww^T, natural (TB, H_out, W_out) output layout.

    wht_ref: (H_in, H_out) = Wh^T   wwt_ref: (W_in, W_out) = Ww^T
    x_ref:   (TB, H_in, W_in)       o_ref:   (TB, H_out, W_out)
    """
    TB, H_in, W_in = x_ref.shape
    H_out = wht_ref.shape[1]
    W_out = wwt_ref.shape[1]
    cdt = x_ref.dtype

    # H-interp: fold the batch into M = TB*W_in -> one big MXU op.
    xt = jnp.transpose(x_ref[...], (0, 2, 1)).reshape(TB * W_in, H_in)     # XLU transpose
    z = jnp.dot(xt, wht_ref[...], preferred_element_type=jnp.float32)      # (TB*W_in, H_out)
    z = z.astype(cdt)                                                       # keep MXU in native dtype

    # W-interp: per-plane XLU transpose to put W_in last, fold M = TB*H_out.
    zt = jnp.transpose(z.reshape(TB, W_in, H_out), (0, 2, 1)).reshape(TB * H_out, W_in)
    out = jnp.dot(zt, wwt_ref[...], preferred_element_type=jnp.float32)     # (TB*H_out, W_out)
    o_ref[...] = out.reshape(TB, H_out, W_out).astype(o_ref.dtype)


def _interp_kernel_tr(wht_ref, wwt_ref, x_ref, o_ref):
    """out_t[b] = (Wh @ x[b] @ Ww^T)^T, lane-dense (TB, W_out, H_out) output.

    Used when W_out < 128 <= H_out so H_out lands on the lane axis (unmasked vst).
    """
    TB, H_in, W_in = x_ref.shape
    H_out = wht_ref.shape[1]
    W_out = wwt_ref.shape[1]
    cdt = x_ref.dtype

    # W-interp first (W_in already on lanes): one big matmul, M = TB*H_in.
    y = jnp.dot(x_ref[...].reshape(TB * H_in, W_in), wwt_ref[...],
                preferred_element_type=jnp.float32)                         # (TB*H_in, W_out)
    y = y.astype(cdt)

    # Per-plane XLU transpose, then H-interp folded over M = TB*W_out.
    yt = jnp.transpose(y.reshape(TB, H_in, W_out), (0, 2, 1)).reshape(TB * W_out, H_in)
    out = jnp.dot(yt, wht_ref[...], preferred_element_type=jnp.float32)     # (TB*W_out, H_out)
    o_ref[...] = out.reshape(TB, W_out, H_out).astype(o_ref.dtype)


@functools.partial(jax.jit, static_argnames=("scale_factor", "size", "mode", "align_corners"))
def interpolate(x, *, scale_factor=None, size=None, mode="bilinear", align_corners=True):
    """Pallas equivalent of F.interpolate(x, size, scale_factor, mode, align_corners).

    x: (N, C, H_in, W_in), NCHW like PyTorch.  Non-float inputs compute/return f32.
    """
    if mode != "bilinear":
        raise NotImplementedError("only bilinear mode is implemented")
    N, C, H_in, W_in = x.shape
    if size is not None:
        H_out, W_out = (size, size) if isinstance(size, int) else tuple(size)
    else:
        if isinstance(scale_factor, (tuple, list)):
            sf_h, sf_w = scale_factor
        else:
            sf_h = sf_w = scale_factor
        H_out, W_out = int(H_in * sf_h), int(W_in * sf_w)

    # MXU-native compute dtype: keep x's float dtype (bf16 stays bf16); ints -> f32.
    if jnp.issubdtype(x.dtype, jnp.floating):
        compute_dtype = x.dtype
        out_dtype = x.dtype
    else:
        compute_dtype = jnp.float32
        out_dtype = jnp.float32
    x = x.astype(compute_dtype)

    # Interpolation matrices: built in f64 on host, pre-cast to the matmul dtype,
    # transposed so both MXU ops are right-multiplies with the batch folded into M.
    wht = jnp.asarray(_interp_matrix(H_out, H_in, align_corners).T, dtype=compute_dtype)  # (H_in, H_out)
    wwt = jnp.asarray(_interp_matrix(W_out, W_in, align_corners).T, dtype=compute_dtype)  # (W_in, W_out)

    NC = N * C
    x_flat = x.reshape(NC, H_in, W_in)

    # Lane-dense output orientation: narrow W_out (<128) but wide H_out -> emit the
    # transposed plane from the kernel and swap back in the wrapper.
    transposed_out = (W_out < 128) and (H_out >= 128) and (H_out > W_out)

    itemsize = np.dtype(compute_dtype).itemsize
    out_isz = np.dtype(out_dtype).itemsize

    # --- choose TB (planes per grid step) from a generation-aware VMEM budget ---
    inter = max(H_in * W_out, W_in * H_out)
    per_plane = (2 * H_in * W_in * itemsize          # double-buffered input block
                 + 2 * H_out * W_out * out_isz       # double-buffered output block
                 + itemsize * (H_in * W_in + 2 * inter)  # in-kernel transposed copies
                 + 4 * (inter + H_out * W_out))      # f32 matmul accumulators

    vmem_cap = _vmem_capacity_bytes()                # 64 MiB v7x, 128 MiB v5e/v6e
    vmem_limit = int(min(vmem_cap * 3 // 4, 96 * 1024 * 1024))   # 48 MiB v7x / 96 MiB v5e,v6e
    weight_bytes = 2 * (wht.size + wwt.size) * itemsize          # both weights, double-buffered
    budget = max(vmem_limit // 2 - weight_bytes, 2 * 1024 * 1024)

    tb_cap = max(1, budget // max(per_plane, 1))
    if NC >= 4:
        tb_cap = min(tb_cap, NC // 4)    # >= 2 grid steps per core even on 2-TC v7x
    elif NC >= 2:
        tb_cap = min(tb_cap, NC // 2)
    TB = _largest_divisor_leq(NC, tb_cap)
    grid = (NC // TB,)

    flops = 2 * NC * (H_in * W_in * H_out + H_out * W_in * W_out)
    bytes_accessed = (NC * H_in * W_in * itemsize
                      + NC * H_out * W_out * out_isz
                      + (wht.size + wwt.size) * itemsize)

    if transposed_out:
        kernel = _interp_kernel_tr
        out_block = (TB, W_out, H_out)
        out_shape = jax.ShapeDtypeStruct((NC, W_out, H_out), out_dtype)
    else:
        kernel = _interp_kernel_nat
        out_block = (TB, H_out, W_out)
        out_shape = jax.ShapeDtypeStruct((NC, H_out, W_out), out_dtype)

    out_flat = pl.pallas_call(
        kernel,
        out_shape=out_shape,
        grid_spec=pltpu.PrefetchScalarGridSpec(
            num_scalar_prefetch=0,
            grid=grid,
            in_specs=[
                pl.BlockSpec((H_in, H_out), lambda i: (0, 0)),
                pl.BlockSpec((W_in, W_out), lambda i: (0, 0)),
                pl.BlockSpec((TB, H_in, W_in), lambda i: (i, 0, 0)),
            ],
            out_specs=pl.BlockSpec(out_block, lambda i: (i, 0, 0)),
        ),
        compiler_params=pltpu.CompilerParams(
            dimension_semantics=("parallel",),
            vmem_limit_bytes=vmem_limit,
        ),
        cost_estimate=pl.CostEstimate(
            flops=int(flops), transcendentals=0, bytes_accessed=int(bytes_accessed)),
    )(wht, wwt, x_flat)

    if transposed_out:
        return out_flat.reshape(N, C, W_out, H_out).swapaxes(-1, -2)
    return out_flat.reshape(N, C, H_out, W_out)


class Interpolate:
    """JAX/Pallas port of flashdepth.helpers.Interpolate."""

    def __init__(self, scale_factor=None, size=None, mode="bilinear", align_corners=True):
        self.scale_factor = scale_factor
        self.size = size
        self.mode = mode
        self.align_corners = align_corners

    def __call__(self, x):
        size = tuple(self.size) if isinstance(self.size, (list, tuple)) else self.size
        sf = tuple(self.scale_factor) if isinstance(self.scale_factor, (list, tuple)) else self.scale_factor
        return interpolate(
            x,
            scale_factor=sf,
            size=size,
            mode=self.mode,
            align_corners=self.align_corners,
        )


if __name__ == "__main__":
    key = jax.random.PRNGKey(0)
    x = jax.random.normal(key, (2, 4, 16, 16), dtype=jnp.float32)
    x_np = np.asarray(x, dtype=np.float64)

    # --- Test 1: scale_factor=2 (natural-layout output path) -------------------
    module = Interpolate(scale_factor=2, mode="bilinear", align_corners=True)
    out = jax.block_until_ready(module(x))
    assert out.shape == (2, 4, 32, 32), out.shape

    # Corner pixels must be preserved exactly for align_corners=True bilinear.
    assert jnp.allclose(out[:, :, 0, 0], x[:, :, 0, 0], atol=1e-5)
    assert jnp.allclose(out[:, :, -1, -1], x[:, :, -1, -1], atol=1e-5)
    assert jnp.allclose(out[:, :, 0, -1], x[:, :, 0, -1], atol=1e-5)

    wh_np = _interp_matrix(32, 16, True)
    ww_np = _interp_matrix(32, 16, True)
    ref = np.einsum("oh,nchw,pw->ncop", wh_np, x_np, ww_np)
    assert np.allclose(np.asarray(out, dtype=np.float64), ref, atol=1e-4), "mismatch vs reference (nat path)"

    # --- Test 2: size=(256, 64) exercising the lane-dense transposed-output path
    module2 = Interpolate(size=(256, 64), mode="bilinear", align_corners=True)
    out2 = jax.block_until_ready(module2(x))
    assert out2.shape == (2, 4, 256, 64), out2.shape

    wh2_np = _interp_matrix(256, 16, True)
    ww2_np = _interp_matrix(64, 16, True)
    ref2 = np.einsum("oh,nchw,pw->ncop", wh2_np, x_np, ww2_np)
    assert np.allclose(np.asarray(out2, dtype=np.float64), ref2, atol=1e-4), "mismatch vs reference (tr path)"

    print("KERNEL_OK")
</pallas_src>

<mosaic_0001>
module attributes {stable_mosaic.version = 11 : i64} {
  func.func @_interp_kernel_nat(%arg0: i32, %arg1: memref<16x32xf32, #tpu.memory_space<vmem>>, %arg2: memref<16x32xf32, #tpu.memory_space<vmem>>, %arg3: memref<2x16x16xf32, #tpu.memory_space<vmem>>, %arg4: memref<2x32x32xf32, #tpu.memory_space<vmem>>) attributes {dimension_semantics = [#tpu.dimension_semantics<parallel>], iteration_bounds = array<i64: 4>, scalar_prefetch = 0 : i64, scratch_operands = 0 : i64, tpu.core_type = #tpu.core_type<tc>, window_params = [{pipeline_mode = #tpu.pipeline_mode<synchronous>, transform_indices = @transform_0, window_bounds = array<i64: 16, 32>}, {pipeline_mode = #tpu.pipeline_mode<synchronous>, transform_indices = @transform_1, window_bounds = array<i64: 16, 32>}, {transform_indices = @transform_2, window_bounds = array<i64: 2, 16, 16>}, {transform_indices = @transform_3, window_bounds = array<i64: 2, 32, 32>}]} {
    %c0 = arith.constant 0 : index
    %c0_0 = arith.constant 0 : index
    %c0_1 = arith.constant 0 : index
    %0 = vector.load %arg3[%c0, %c0_0, %c0_1] : memref<2x16x16xf32, #tpu.memory_space<vmem>>, vector<2x16x16xf32>
    %1 = tpu.transpose %0, [0, 2, 1] : vector<2x16x16xf32> -> vector<2x16x16xf32>
    %2 = vector.shape_cast %1 : vector<2x16x16xf32> to vector<32x16xf32>
    %c0_2 = arith.constant 0 : index
    %c0_3 = arith.constant 0 : index
    %3 = vector.load %arg1[%c0_2, %c0_3] : memref<16x32xf32, #tpu.memory_space<vmem>>, vector<16x32xf32>
    %cst = arith.constant dense<0.000000e+00> : vector<32x32xf32>
    %4 = tpu.matmul %2, %3, %cst {dimension_numbers = #tpu.dot_dimension_numbers<[1], [0], [0], [1], [0, 0, 1, 1], [], []>} : vector<32x16xf32>, vector<16x32xf32>, vector<32x32xf32> -> vector<32x32xf32>
    %5 = vector.shape_cast %4 : vector<32x32xf32> to vector<2x16x32xf32>
    %6 = tpu.transpose %5, [0, 2, 1] : vector<2x16x32xf32> -> vector<2x32x16xf32>
    %7 = vector.shape_cast %6 : vector<2x32x16xf32> to vector<64x16xf32>
    %c0_4 = arith.constant 0 : index
    %c0_5 = arith.constant 0 : index
    %8 = vector.load %arg2[%c0_4, %c0_5] : memref<16x32xf32, #tpu.memory_space<vmem>>, vector<16x32xf32>
    %cst_6 = arith.constant dense<0.000000e+00> : vector<64x32xf32>
    %9 = tpu.matmul %7, %8, %cst_6 {dimension_numbers = #tpu.dot_dimension_numbers<[1], [0], [0], [1], [0, 0, 1, 1], [], []>} : vector<64x16xf32>, vector<16x32xf32>, vector<64x32xf32> -> vector<64x32xf32>
    %10 = vector.shape_cast %9 : vector<64x32xf32> to vector<2x32x32xf32>
    %c0_7 = arith.constant 0 : index
    %c0_8 = arith.constant 0 : index
    %c0_9 = arith.constant 0 : index
    %11 = vector.load %arg4[%c0_7, %c0_8, %c0_9] : memref<2x32x32xf32, #tpu.memory_space<vmem>>, vector<2x32x32xf32>
    tpu.vector_store %arg4[%c0_7, %c0_8, %c0_9], %10 {strides = array<i32>} : memref<2x32x32xf32, #tpu.memory_space<vmem>>, vector<2x32x32xf32>,
    return
  }
  func.func @transform_0(%arg0: i32) -> (i32, i32) {
    %c0_i32 = arith.constant 0 : i32
    %c0_i32_0 = arith.constant 0 : i32
    %c0_i32_1 = arith.constant 0 : i32
    return %c0_i32, %c0_i32_0 : i32, i32
  }
  func.func @transform_1(%arg0: i32) -> (i32, i32) {
    %c0_i32 = arith.constant 0 : i32
    %c0_i32_0 = arith.constant 0 : i32
    %c0_i32_1 = arith.constant 0 : i32
    return %c0_i32, %c0_i32_0 : i32, i32
  }
  func.func @transform_2(%arg0: i32) -> (i32, i32, i32) {
    %c0_i32 = arith.constant 0 : i32
    %c0_i32_0 = arith.constant 0 : i32
    %c0_i32_1 = arith.constant 0 : i32
    return %arg0, %c0_i32, %c0_i32_0 : i32, i32, i32
  }
  func.func @transform_3(%arg0: i32) -> (i32, i32, i32) {
    %c0_i32 = arith.constant 0 : i32
    %c0_i32_0 = arith.constant 0 : i32
    %c0_i32_1 = arith.constant 0 : i32
    return %arg0, %c0_i32, %c0_i32_0 : i32, i32, i32
  }
}

</mosaic_0001>

<bundles_post_ra>
// kernel: interpolate.1
= control target key start
LH: loop header
LB: loop body
LE: loop exit
PB: predicated region body
PF: predicated region fallthrough
CT: control target
= control target key end

     0   :  { %8 = vsyncpa [#allocation3], 0  ;;  %s1307_s0 = inlined_call_operand.hbm [shape: f32[16,32], index: 0, kind: input, shape index: {}, may-alias: {0,1}]   ;;  %s1308_s1 = inlined_call_operand.hbm [shape: f32[16,32], index: 1, kind: input, shape index: {}, may-alias: {0,1}]   ;;  %s1309_s2 = inlined_call_operand.hbm [shape: f32[8,16,16], index: 2, kind: input, shape index: {}]   ;;  %s1310_s3 = inlined_call_operand.hbm [shape: f32[8,32,32], index: 3, kind: output, shape index: {}]  }
   0x1   :  { %9 = vsyncpa [#allocation6], 0 }
   0x2   :  { %10 = vsyncpa [#allocation4], 0 }
   0x3   :  { %12 = vsyncpa [#allocation4 + $0x1], 0  ;;  %s1048_s12 = smov 0   ;;  %s1050_s13 = smov 0  }
   0x4   :  { %s1052_s14 = smov 0   ;;  %s1054_s15 = smov 0  }
   0x5 LB: > { %s1069_s16 = sadd.s32 4294967295, %s1018_s15   ;;  %s698_s17 = sadd.s32 4294967294, %s1018_s15   ;;  %s1018_s15 = sphi %s1054_s15, %s1337_s15   ;;  %s1014_s14 = sphi %s1052_s14, %s1336_s14   ;;  %s1010_s13 = sphi %s1050_s13, %s1335_s13   ;;  %s1006_s12 = sphi %s1048_s12, %s1334_s12  }
   0x6   : > { %s1073_s18 = sadd.s32 1, %s1018_s15   ;;  %s67_s19 = sadd.s32 1, %s1014_s14 }
   0x7   : > { %s64_s20 = ssub.s32 %s1018_s15, %s1073_s18  ;;  %p74_p0 = scmp.ne.s32.totalorder %s1014_s14, %s1010_s13 }
   0x8   : > { %p65_p1 = scmp.eq.s32.totalorder %s64_s20, 0  ;;  %p75_p2 = scmp.eq.s32.totalorder %s1018_s15, 0 }
   0x9   : > { %p80_p3 = scmp.ne.s32.totalorder %s1010_s13, %s1006_s12  ;;  %p1311_p4 = scmp.eq.s32.totalorder %s1069_s16, 0 }
   0xa   : > { %s1085_s21 = scalar_select %p65_p1, %s1014_s14, %s67_s19  }
   0xb   : > { %p1087_p5 = por %p75_p2, %p74_p0  ;;  %p1093_p6 = por %p1311_p4, %p80_p3 }
   0xc   : > { %p104_p7 = scmp.eq.s32.totalorder %s1069_s16, 3  ;;  %p110_p8 = scmp.eq.s32.totalorder %s698_s17, 3 }
   0xd   : > { %s1316_s22 = scalar_select %p1087_p5, 1, 0 }
   0xe   : > { %s1317_s23 = scalar_select %p1093_p6, 1, 0 }
   0xf   : > { %p699_p9 = scmp.ge.s32.totalorder %s1018_s15, 1  ;;  %p117_p10 = scmp.lt.s32.totalorder %s1018_s15, 5 }
  0x10   : > { %p1100_p11 = por %p104_p7, %p74_p0  ;;  %p1104_p12 = por %p110_p8, %p80_p3 }
  0x11   : > { %p1108_p13 = pnand %p699_p9, %p117_p10  ;;  %s1020_s27 = smov [#allocation2]  }
  0x12   : > { %s1318_s24 = scalar_select %p1100_p11, 1, 0 }
  0x13   : > { %s1319_s25 = scalar_select %p1104_p12, 1, 0 }
  0x14   : > { %s1320_s26 = scalar_select %p1108_p13, 1, 0 }
  0x15   : > { %p798_p1 = pneg %p1108_p13  ;;  %s129_s28 = sshll.u32 %s1020_s27, 4  ;;  %s130_s28 = int_to_ptr.vmem [resolvable:$true] %s129_s28 }
  0x16   : > { %s1021_s30 = smov [#allocation5]   ;;  %s858_s7 = scalar_lea.hbm %s1307_s0, 256 }
  0x17   : > { %p1116_p2 = pnand %p798_p1, %p1311_p4  ;;  %s142_s4 = sshll.u32 %s1021_s30, 4  ;;  %s143_s4 = int_to_ptr.vmem [resolvable:$true] %s142_s4 }
  0x18   : > { %p859_p3 = scmp.ne.s32.totalorder %s1307_s0, %s858_s7  ;;  %p865_p10 = scmp.lt.u32.totalorder %s858_s7, %s1307_s0 }
  0x19   : > { %p860_p7 = pneg %p1116_p2 }
  0x1b   : > { %p861_p8 = pnand %p860_p7, %p859_p3 }
  0x1d   : > { %p862_p9 = pneg %p861_p8 }
  0x1f   : > { %p867_p1 = pnand %p865_p10, %p862_p9 }
  0x21   : > { %870 = shalt.err (!%p867_p1)
}
  0x22   : > { %s871_s17 = scalar_lea.vmem %s130_s28, 256  ;;  %p879_p11 = scmp.lt.s32.totalorder %s130_s28, %s130_s28 }
  0x23   : > { %p872_p4 = scmp.ne.s32.totalorder %s130_s28, %s871_s17  ;;  %p880_p6 = scmp.lt.s32.totalorder %s871_s17, %s871_s17 }
  0x25   : > { %p874_p0 = pnand %p872_p4, %p860_p7  ;;  %p881_p13 = por %p880_p6, %p879_p11 }
  0x27   : > { %p875_p12 = pneg %p874_p0 }
  0x29   : > { %p882_p5 = pnand %p881_p13, %p875_p12 }
  0x2b   : > { %885 = shalt.err (!%p882_p5)
}
  0x2c   : > { %s1022_s19 = smov 128   ;;  %s1023_s20 = smov 8  }
  0x2d   : > { %801 = dma.hbm_to_vmem [thread:$0]  (!%p1116_p2), %s1307_s0, 256, %s130_s28, [#allocation3], %s1022_s19, %s1022_s19, %s1023_s20  }
  0x2e   : > { %p1322_p4 = scmp.ne.s32.totalorder %s1316_s22, 0  ;;  %p1323_p0 = scmp.lt.s32.totalorder %s1018_s15, 4 }
  0x2f   : > { %s886_s8 = scalar_lea.hbm %s1308_s1, 256 }
  0x30   : > { %p1150_p3 = pnand %p1323_p0, %p1322_p4  ;;  %p887_p5 = scmp.ne.s32.totalorder %s1308_s1, %s886_s8 }
  0x31   : > { %p893_p12 = scmp.lt.u32.totalorder %s886_s8, %s1308_s1 }
  0x32   : > { %s1324_s5 = scalar_select %p1150_p3, 1, 0 }
  0x33   : > { %p889_p6 = pnand %p887_p5, %p860_p7 }
  0x35   : > { %p890_p11 = pneg %p889_p6 }
  0x37   : > { %p895_p13 = pnand %p893_p12, %p890_p11 }
  0x39   : > { %898 = shalt.err (!%p895_p13)
}
  0x3a   : > { %s899_s11 = scalar_lea.vmem %s143_s4, 256  ;;  %p907_p1 = scmp.lt.s32.totalorder %s143_s4, %s143_s4 }
  0x3b   : > { %p900_p8 = scmp.ne.s32.totalorder %s143_s4, %s899_s11  ;;  %p908_p4 = scmp.lt.s32.totalorder %s899_s11, %s899_s11 }
  0x3d   : > { %p902_p9 = pnand %p900_p8, %p860_p7  ;;  %p909_p0 = por %p908_p4, %p907_p1 }
  0x3f   : > { %p903_p10 = pneg %p902_p9 }
  0x41   : > { %p910_p3 = pnand %p909_p0, %p903_p10 }
  0x43   : > { %913 = shalt.err (!%p910_p3)
}
  0x44   : > { %804 = dma.hbm_to_vmem [thread:$0]  (!%p1116_p2), %s1308_s1, 256, %s143_s4, [#allocation6], %s1022_s19, %s1022_s19, %s1023_s20  }
  0x45   : > { %s156_s30 = sand.u32 1, %s1018_s15   ;;  %s158_s6 = sand.u32 1, %s1014_s14  }
  0x46   : > { %s703_s7 = sshll.u32 %s158_s6, 5  ;;  %s731_s8 = sshll.u32 %s1018_s15, 9 }
  0x47   : > { %s1183_s29 = scalar_lea.hbm %s1309_s2, %s731_s8  ;;  %s160_s28 = scalar_lea.vmem [#allocation7], %s703_s7 }
  0x48   : > { %s168_s22 = sshll.u32 %s160_s28, 4  ;;  %s1187_s11 = scalar_lea.sflag [#allocation3], %s156_s30  ;;  %s1185_s22 = int_to_ptr.vmem [resolvable:$true] %s168_s22 }
  0x49   : > { %s914_s4 = scalar_lea.hbm %s1183_s29, 512  ;;  %p1325_p7 = scmp.ne.s32.totalorder %s1324_s5, 0 }
  0x4a   : > { %p915_p2 = scmp.ne.s32.totalorder %s1183_s29, %s914_s4  ;;  %s919_s6 = scalar_lea.hbm %s1309_s2, 2048 }
  0x4b   : > { %p916_p3 = pneg %p1325_p7  ;;  %p920_p11 = scmp.lt.u32.totalorder %s1183_s29, %s1309_s2 }
  0x4c   : > { %p921_p12 = scmp.lt.u32.totalorder %s919_s6, %s914_s4  ;;  %p923_p8 = scmp.lt.u32.totalorder %s914_s4, %s1183_s29 }
  0x4d   : > { %p917_p5 = pnand %p916_p3, %p915_p2 }
  0x4e   : > { %p922_p13 = por %p921_p12, %p920_p11 }
  0x4f   : > { %p918_p6 = pneg %p917_p5 }
  0x50   : > { %p924_p9 = por %p923_p8, %p922_p13 }
  0x52   : > { %p925_p10 = pnand %p924_p9, %p918_p6 }
  0x54   : > { %928 = shalt.err (!%p925_p10)
}
  0x55   : > { %s929_s30 = scalar_lea.vmem %s1185_s22, 512  ;;  %s1024_s7 = smov [#allocation7]  }
  0x56   : > { %p930_p1 = scmp.ne.s32.totalorder %s1185_s22, %s929_s30  ;;  %s934_s10 = sshll.u32 %s1024_s7, 4  ;;  %s935_s10 = int_to_ptr.vmem [resolvable:$false] %s934_s10 }
  0x57   : > { %s936_s28 = scalar_lea.vmem %s935_s10, 1024  ;;  %p937_p2 = scmp.lt.s32.totalorder %s1185_s22, %s935_s10 }
  0x58   : > { %p932_p4 = pnand %p930_p1, %p916_p3  ;;  %p938_p5 = scmp.lt.s32.totalorder %s936_s28, %s929_s30 }
  0x5a   : > { %p933_p0 = pneg %p932_p4  ;;  %p939_p11 = por %p938_p5, %p937_p2 }
  0x5c   : > { %p940_p12 = pnand %p939_p11, %p933_p0 }
  0x5e   : > { %943 = shalt.err (!%p940_p12)
}
  0x5f   : > { %808 = dma.hbm_to_vmem [thread:$0]  (!%p1325_p7), %s1183_s29, 512, %s1185_s22, %s1187_s11, %s1022_s19, %s1022_s19, %s1023_s20  }
  0x60   : > { %p1326_p3 = scmp.ne.s32.totalorder %s1320_s26, 0 }
  0x61   : > { %p1327_p6 = scmp.eq.s32.totalorder (!%p1326_p3), %s1069_s16, 0 }
  0x62   : > { %180 = sbr.rel (%p1326_p3) target bundleno = 838 (0x346), region = 32 }
  0x69   : > { %989 = dma.done.wait (%p1327_p6), [#allocation3], 256   ;;  %p1328_p13 = pmov %p1327_p6 }
  0x6a   : > { %p1329_p8 = pmov %p1327_p6 }
  0x6b   : > { %991 = vsyncadd (%p1328_p13), [#allocation3], 4294967040 }
  0x6c   : > { %993 = dma.done.wait (%p1329_p8), [#allocation6], 256   ;;  %p1330_p9 = pmov %p1327_p6 }
  0x6d   : > { %s190_s5 = sand.u32 1, %s1069_s16   ;;  %s1230_s19 = sand.u32 1, %s1010_s13  }
  0x6e   : > { %995 = vsyncadd (%p1330_p9), [#allocation6], 4294967040  ;;  %s710_s26 = sshll.u32 %s1230_s19, 5  ;;  %s191_s20 = scalar_lea.sflag [#allocation3], %s190_s5 }
  0x6f   : > { %s194_s29 = scalar_lea.vmem [#allocation7], %s710_s26  ;;  %p1331_p7 = scmp.ne.s32.totalorder %s1317_s23, 0 }
  0x71   : > { %997 = dma.done.wait (%p1331_p7), %s191_s20, 512  }
  0x72   : > { %999 = vsyncadd (%p1331_p7), %s191_s20, 4294966784  ;;  %v219_v0 = vld [vmem:[%s194_s29] sm:$0xff]  ;;  %v221_v1 = vld [vmem:[%s194_s29 + $0x10] sm:$0xff]  ;;  %vm289_vm0 = vcmask 130048   ;;  %s711_s23 = sshll.u32 %s1230_s19, 6  ;;  %vm582_vm1 = vcmask 261120  }
  0x73   : > { %223 = vxpose.xlu0.b32.start [1/2] (short) (narrow) %v219_v0, 16  ;;  %255 = vxpose.xlu1.b32.start [1/2] (short) (narrow) %v221_v1, 16  ;;  %v287_v2 = vld [vmem:[#allocation2] sm:$0xff]  ;;  %v288_v3 = vld [vmem:[#allocation2 + $0x8] sm:$0xff]  ;;  %v222_v5 = vld [vmem:[%s194_s29 + $0x18] sm:$0xff]  ;;  %s216_s22 = scalar_lea.vmem [#allocation8], %s711_s23 }
  0x74   : > { %v220_v4 = vld [vmem:[%s194_s29 + $0x8] sm:$0xff]  ;;  %v776_v6 = vpack.c.bf16 %v288_v3, %v287_v2  ;;  %v451_v12 = vld [vmem:[#allocation5] sm:$0xff]  ;;  %v452_v13 = vld [vmem:[#allocation5 + $0x8] sm:$0xff]  ;;  %s606_s11 = sshll.u32 %s216_s22, 4  ;;  %s733_s4 = sshll.u32 %s1069_s16, 10  ;;  %s1256_s11 = int_to_ptr.vmem [resolvable:$true] %s606_s11 }
  0x75   : > { %v780_v15 = vpack.c.bf16 %v452_v13, %v451_v12  ;;  %s1262_s6 = scalar_lea.hbm %s1310_s3, %s733_s4  ;;  %s592_s16 = scalar_lea.sflag [#allocation4], %s1230_s19 }
  0x76   : > { %777 = vmatprep.subr.bf16.mxu0 %v776_v6  ;;  %s944_s8 = scalar_lea.vmem %s1256_s11, 1024  ;;  %p1332_p1 = scmp.ne.s32.totalorder %s1318_s24, 0 }
  0x77   : > { %224 = vxpose.xlu0.b32.end [2/2] (short) (narrow) %v220_v4, 16  ;;  %256 = vxpose.xlu1.b32.end [2/2] (short) (narrow) %v222_v5, 16  ;;  %p945_p10 = scmp.ne.s32.totalorder %s1256_s11, %s944_s8  ;;  %s1025_s9 = smov [#allocation8]  }
  0x78   : > { %779 = vmatpush3.bf16.msra.mxu0 %v776_v6  ;;  %784 = vmatprep.subr.bf16.mxu1 %v780_v15  ;;  %s948_s30 = sshll.u32 %s1025_s9, 4  ;;  %s949_s30 = int_to_ptr.vmem [resolvable:$false] %s948_s30 }
  0x79   : > { %781 = vmatprep.subr.bf16.mxu0 %v780_v15  ;;  %785 = vmatpush3.bf16.msra.mxu1 %v780_v15  ;;  %p946_p4 = pnand %p945_p10, %p1332_p1  ;;  %s950_s7 = scalar_lea.vmem %s949_s30, 2048 }
  0x7a   : > { %p951_p2 = scmp.lt.s32.totalorder %s1256_s11, %s949_s30  ;;  %p952_p5 = scmp.lt.s32.totalorder %s950_s7, %s944_s8 }
  0x7b   : > { %p947_p0 = pneg %p946_p4 }
  0x7c   : > { %p953_p11 = por %p952_p5, %p951_p2 }
  0x7e   : > { %p954_p12 = pnand %p953_p11, %p947_p0 }
  0xf3   : > { %v239_v7 = vpop.trf.xlu0  ;;  %v271_v8 = vpop.trf.xlu1 }
  0xf4   : > { %754 = vmatprep.mubr.msk.f32.mxu0 %vm289_vm0, %v239_v7 }
  0xf7   : > { %v240_v9 = vpop.trf.xlu0  ;;  %v272_v10 = vpop.trf.xlu1 }
  0xf8   : > { %755 = vmatmul.mubr.msk.f32.vlgmr.msra.gmra.mrb[0].mxu0 %vm289_vm0, %v240_v9 }
  0xf9   : > { %757 = vmatprep.mubr.msk.f32.mxu0 %vm289_vm0, %v271_v8  ;;  %783 = vmatpush3.bf16.msra.mxu0 %v780_v15 }
  0xfc   : > { %758 = vmatmul.mubr.msk.f32.gmra.mrb[2].mxu0 %vm289_vm0, %v272_v10 }
 0x1cb   : > { %v756_v11 = vpop.f32.mrb[0].mxu0 }
 0x1cc   : > { %v368_v14 = vpop.f32.mrb[1].mxu0 }
 0x1cd   : > { %387 = vxpose.xlu0.b32.start [1/2] (short) (narrow) %v368_v14, 32 }
 0x1cf   : > { %v759_v16 = vpop.f32.mrb[2].mxu0 }
 0x1d0   : > { %v378_v17 = vpop.f32.mrb[3].mxu0 }
 0x1d1   : > { %388 = vxpose.xlu0.b32.end [2/2] (short) (narrow) %v756_v11, 32  ;;  %419 = vxpose.xlu1.b32.start [1/2] (short) (narrow) %v378_v17, 32 }
 0x1d5   : > { %420 = vxpose.xlu1.b32.end [2/2] (short) (narrow) %v759_v16, 32 }
 0x24d   : > { %v403_v18 = vpop.trf.xlu0 }
 0x24e   : > { %764 = vmatprep.mubr.msk.f32.mxu0 %vm289_vm0, %v403_v18 }
 0x251   : > { %v404_v19 = vpop.trf.xlu0  ;;  %v435_v20 = vpop.trf.xlu1 }
 0x252   : > { %765 = vmatmul.mubr.msk.f32.vlgmr.msra.gmra.mrb[4].mxu0 %vm289_vm0, %v404_v19 }
 0x255   : > { %v405_v21 = vpop.trf.xlu0  ;;  %v436_v22 = vpop.trf.xlu1 }
 0x256   : > { %767 = vmatprep.mubr.msk.f32.mxu1 %vm289_vm0, %v405_v21 }
 0x259   : > { %v406_v23 = vpop.trf.xlu0  ;;  %v437_v24 = vpop.trf.xlu1 }
 0x25a   : > { %768 = vmatmul.mubr.msk.f32.vlgmr.msra.gmra.mrb[0].mxu1 %vm289_vm0, %v406_v23 }
 0x25b   : > { %770 = vmatprep.mubr.msk.f32.mxu1 %vm289_vm0, %v435_v20 }
 0x25d   : > { %v438_v25 = vpop.trf.xlu1 }
 0x25e   : > { %771 = vmatmul.mubr.msk.f32.gmra.mrb[2].mxu1 %vm289_vm0, %v436_v22 }
 0x25f   : > { %773 = vmatprep.mubr.msk.f32.mxu1 %vm289_vm0, %v437_v24 }
 0x262   : > { %774 = vmatmul.mubr.msk.f32.gmra.mrb[4].mxu1 %vm289_vm0, %v438_v25 }
 0x325   : > { %v766_v26 = vpop.f32.mrb[4].mxu0 }
 0x326   : > { %584 = vst.msk [vmem:[%s216_s22 + $0x8] sm:$0xff] %vm582_vm1, %v766_v26  ;;  %v543_v27 = vpop.f32.mrb[5].mxu0 }
 0x327   : > { %583 = vst.msk [vmem:[%s216_s22] sm:$0xff] %vm582_vm1, %v543_v27 }
 0x32d   : > { %v769_v28 = vpop.f32.mrb[0].mxu1 }
 0x32e   : > { %586 = vst.msk [vmem:[%s216_s22 + $0x18] sm:$0xff] %vm582_vm1, %v769_v28  ;;  %v553_v29 = vpop.f32.mrb[1].mxu1 }
 0x32f   : > { %585 = vst.msk [vmem:[%s216_s22 + $0x10] sm:$0xff] %vm582_vm1, %v553_v29 }
 0x331   : > { %v772_v30 = vpop.f32.mrb[2].mxu1 }
 0x332   : > { %588 = vst.msk [vmem:[%s216_s22 + $0x28] sm:$0xff] %vm582_vm1, %v772_v30  ;;  %v563_v31 = vpop.f32.mrb[3].mxu1 }
 0x333   : > { %587 = vst.msk [vmem:[%s216_s22 + $0x20] sm:$0xff] %vm582_vm1, %v563_v31 }
 0x335   : > { %v775_v32 = vpop.f32.mrb[4].mxu1 }
 0x336   : > { %590 = vst.msk [vmem:[%s216_s22 + $0x38] sm:$0xff] %vm582_vm1, %v775_v32  ;;  %v573_v33 = vpop.f32.mrb[5].mxu1 }
 0x337   : > { %589 = vst.msk [vmem:[%s216_s22 + $0x30] sm:$0xff] %vm582_vm1, %v573_v33 }
 0x338   : > { %957 = shalt.err (!%p954_p12)
}
 0x339   : > { %s958_s10 = scalar_lea.hbm %s1262_s6, 1024  ;;  %s962_s26 = scalar_lea.hbm %s1310_s3, 4096 }
 0x33a   : > { %p959_p3 = scmp.ne.s32.totalorder %s1262_s6, %s958_s10  ;;  %p963_p8 = scmp.lt.u32.totalorder %s1262_s6, %s1310_s3 }
 0x33b   : > { %p964_p9 = scmp.lt.u32.totalorder %s962_s26, %s958_s10  ;;  %p966_p10 = scmp.lt.u32.totalorder %s958_s10, %s1262_s6 }
 0x33c   : > { %p960_p6 = pnand %p959_p3, %p1332_p1 }
 0x33d   : > { %p965_p7 = por %p964_p9, %p963_p8 }
 0x33e   : > { %p961_p13 = pneg %p960_p6 }
 0x33f   : > { %p967_p4 = por %p966_p10, %p965_p7 }
 0x341   : > { %p968_p0 = pnand %p967_p4, %p961_p13 }
 0x343   : > { %971 = shalt.err (!%p968_p0)
}
 0x344   : > { %s1026_s23 = smov 128   ;;  %s1027_s22 = smov 8  }
 0x345   : > { %796 = dma.vmem_to_hbm [thread:$0]  (%p1332_p1), %s1256_s11, 1024, %s1262_s6, %s592_s16, %s1026_s23, %s1026_s23, %s1027_s22  }
 0x346 PF: > { %p818_p2 = scmp.ge.s32.totalorder %s1018_s15, 2  ;;  %s621_s4 = sand.u32 1, %s1006_s12  }
 0x347   : > { %p1333_p5 = scmp.ne.s32.totalorder %s1319_s25, 0  ;;  %s622_s17 = scalar_lea.sflag [#allocation4], %s621_s4 }
 0x349   : > { %p810_p11 = pnand %p818_p2, %p1333_p5 }
 0x34b   : > { %1001 = dma.done.wait (!%p810_p11), %s622_s17, 1024  }
 0x34c   : > { %1003 = vsyncadd (!%p810_p11), %s622_s17, 4294966272  ;;  %p15_p12 = scmp.ge.s32.totalorder %s1073_s18, 6   ;;  %s1334_s12 = smov %s1010_s13 }
 0x34d   : > { %s1335_s13 = smov %s1014_s14  ;;  %s1336_s14 = smov %s1085_s21 }
 0x34e   : > { %s1337_s15 = smov %s1073_s18  ;;  %17 = sbr.rel (!%p15_p12) target bundleno = 5 (0x5), region = 84 }
 0x355   :  { %627 = vsyncpa [#allocation3], 1 }
 0x356   :  { %629 = vsyncpa [#allocation3 + $0x1], 1 }
 0x357   :  { %630 = vsyncpa [#allocation6], 1 }
 0x358   :  { %631 = vsyncpa [#allocation4], 1 }
 0x359   :  { %633 = vsyncpa [#allocation4 + $0x1], 1 }

</bundles_post_ra>
